<compile_context>
chip_gen: v7x
topology: tpu7x:2x2x1
jax: 0.10.0
libtpu: 0.0.40
codegen_flags: <defaults>
</compile_context>

<pallas_src>
import functools
import math
from typing import NamedTuple

import jax
import jax.numpy as jnp
from jax.experimental import pallas as pl
from jax.experimental.pallas import tpu as pltpu


def _round_up(x, n):
    return ((x + n - 1) // n) * n


def _pad_dim(n, *, threshold=192):
    # v6e/v7x MXUs are 256 lanes wide; feed full columns once the real dim is
    # large enough.  Below the threshold 128 keeps padding waste minimal (and
    # perfectly feeds v5e's 128-wide MXU).
    return _round_up(n, 256) if n >= threshold else _round_up(n, 128)


# VMEM planning: working-set budget chosen so the per-step footprint (double
# buffers on streamed blocks, single buffers on resident weights) fits inside
# v7x's 64 MiB physical VMEM with headroom; v5e/v6e (128 MiB) are covered too.
_VMEM_BUDGET = 44 * 1024 * 1024
_VMEM_LIMIT = 56 * 1024 * 1024


def _footprint_bytes(tm, tk, nk, h_pad, c_pad):
    b = 0
    b += 2 * tm * tk * 2                         # x tile, bf16, double buffered
    b += (2 if nk > 1 else 1) * tk * h_pad * 2   # fc weight tile, bf16
    b += h_pad * c_pad * 2                       # cls weight, bf16, single buf
    b += h_pad * 4 + c_pad * 4                   # biases, f32, single buf
    b += 2 * tm * c_pad * 4                      # out tile, f32, double buffered
    if nk > 1:
        b += tm * h_pad * 4                      # fp32 accumulator scratch
    return b


class CLSMeta(NamedTuple):
    dim1: int
    dim2: int
    clas: int
    d_pad: int
    h_pad: int
    c_pad: int
    tk: int
    nk: int


# ---------------------------------------------------------------------------
# Pallas kernels
# ---------------------------------------------------------------------------
def _cls_kernel(x_ref, w1_ref, b1_ref, w2_ref, b2_ref, o_ref):
    # Single-pass: whole contraction resident.  bf16 MXU, fp32 accumulation.
    h = jnp.dot(x_ref[...], w1_ref[...], preferred_element_type=jnp.float32)
    h = jnp.maximum(h + b1_ref[...], 0.0).astype(w2_ref.dtype)
    y = jnp.dot(h, w2_ref[...], preferred_element_type=jnp.float32)
    o_ref[...] = (y + b2_ref[...]).astype(o_ref.dtype)


def _cls_kernel_ktiled(x_ref, w1_ref, b1_ref, w2_ref, b2_ref, o_ref, acc_ref):
    # K-tiled contraction with fp32 accumulator; epilogue only on last K step.
    k = pl.program_id(1)

    @pl.when(k == 0)
    def _():
        acc_ref[...] = jnp.zeros_like(acc_ref)

    acc_ref[...] += jnp.dot(x_ref[...], w1_ref[...],
                            preferred_element_type=jnp.float32)

    @pl.when(k == pl.num_programs(1) - 1)
    def _():
        h = jnp.maximum(acc_ref[...] + b1_ref[...], 0.0).astype(w2_ref.dtype)
        y = jnp.dot(h, w2_ref[...], preferred_element_type=jnp.float32)
        o_ref[...] = (y + b2_ref[...]).astype(o_ref.dtype)


# ---------------------------------------------------------------------------
# One-time weight packing (outside the hot path)
# ---------------------------------------------------------------------------
def prepare_cls_params(params, *, force_tk=None):
    """Transpose to (in, out) layout, zero-pad to lane-dense multiples, and
    cast the matmul operands to bf16.  Call once at init; the result is reused
    by every forward pass."""
    fc_w = jnp.asarray(params['fc_w'])      # (dim2, dim1), PyTorch layout
    fc_b = jnp.asarray(params['fc_b'])      # (dim2,)
    cls_w = jnp.asarray(params['cls_w'])    # (clas, dim2)
    cls_b = jnp.asarray(params['cls_b'])    # (clas,)
    dim2, dim1 = fc_w.shape
    clas = cls_w.shape[0]

    d_pad = _round_up(dim1, 128)
    h_pad = _pad_dim(dim2)
    c_pad = _pad_dim(clas)

    # Contraction (dim1) tiling: cap the resident fc-weight slab at ~1/4 of
    # the VMEM budget so tm can stay large even for big dim1.
    if force_tk is not None:
        tk = _round_up(min(force_tk, d_pad), 128)
    else:
        tk = d_pad
        while tk > 128 and tk * h_pad * 2 > _VMEM_BUDGET // 4:
            tk = _round_up(tk // 2, 128)
    nk = -(-d_pad // tk)
    d_pad = nk * tk

    w1 = jnp.pad(jnp.transpose(fc_w), ((0, d_pad - dim1), (0, h_pad - dim2)))
    w2 = jnp.pad(jnp.transpose(cls_w), ((0, h_pad - dim2), (0, c_pad - clas)))
    b1 = jnp.pad(fc_b, (0, h_pad - dim2)).reshape(1, h_pad)
    b2 = jnp.pad(cls_b, (0, c_pad - clas)).reshape(1, c_pad)

    weights = dict(
        w1=w1.astype(jnp.bfloat16),
        b1=b1.astype(jnp.float32),
        w2=w2.astype(jnp.bfloat16),
        b2=b2.astype(jnp.float32),
    )
    meta = CLSMeta(dim1=dim1, dim2=dim2, clas=clas,
                   d_pad=d_pad, h_pad=h_pad, c_pad=c_pad, tk=tk, nk=nk)
    return weights, meta


# ---------------------------------------------------------------------------
# Forward pass wrapper
# ---------------------------------------------------------------------------
def cls_forward(x, weights, meta: CLSMeta, *, tm_max=512):
    """x: (b, s, dim1).  weights/meta from prepare_cls_params."""
    b, s, d = x.shape
    assert d == meta.dim1, (d, meta.dim1)
    m = b * s
    d_pad, h_pad, c_pad = meta.d_pad, meta.h_pad, meta.c_pad
    tk, nk = meta.tk, meta.nk

    # Balanced M tiling (padding waste < one 8-row sublane per tile).
    nm = max(1, -(-m // tm_max))
    if nm == 1 and m >= 256:
        nm = 2  # let v7x's second TensorCore take half; negligible on v5e/v6e
    tm = _round_up(-(-m // nm), 8)
    while tm > 8 and _footprint_bytes(tm, tk, nk, h_pad, c_pad) > _VMEM_BUDGET:
        tm = _round_up(tm // 2, 8)
    nm = -(-m // tm)
    m_pad = nm * tm

    xp = jnp.pad(x.reshape(m, d).astype(jnp.bfloat16),
                 ((0, m_pad - m), (0, d_pad - d)))

    flops = 2 * m_pad * (d_pad * h_pad + h_pad * c_pad)
    bytes_accessed = (m_pad * d_pad * 2 + d_pad * h_pad * 2
                      + h_pad * c_pad * 2 + (h_pad + c_pad) * 4
                      + m_pad * c_pad * 4)
    cost = pl.CostEstimate(flops=flops, transcendentals=0,
                           bytes_accessed=bytes_accessed)

    w1, b1, w2, b2 = weights['w1'], weights['b1'], weights['w2'], weights['b2']

    if nk == 1:
        out = pl.pallas_call(
            _cls_kernel,
            out_shape=jax.ShapeDtypeStruct((m_pad, c_pad), jnp.float32),
            grid=(nm,),
            in_specs=[
                pl.BlockSpec((tm, d_pad), lambda i: (i, 0)),
                pl.BlockSpec((d_pad, h_pad), lambda i: (0, 0),
                             pipeline_mode=pl.Buffered(1)),
                pl.BlockSpec((1, h_pad), lambda i: (0, 0),
                             pipeline_mode=pl.Buffered(1)),
                pl.BlockSpec((h_pad, c_pad), lambda i: (0, 0),
                             pipeline_mode=pl.Buffered(1)),
                pl.BlockSpec((1, c_pad), lambda i: (0, 0),
                             pipeline_mode=pl.Buffered(1)),
            ],
            out_specs=pl.BlockSpec((tm, c_pad), lambda i: (i, 0)),
            compiler_params=pltpu.CompilerParams(
                dimension_semantics=("parallel",),
                vmem_limit_bytes=_VMEM_LIMIT),
            cost_estimate=cost,
        )(xp, w1, b1, w2, b2)
    else:
        out = pl.pallas_call(
            _cls_kernel_ktiled,
            out_shape=jax.ShapeDtypeStruct((m_pad, c_pad), jnp.float32),
            grid=(nm, nk),
            in_specs=[
                pl.BlockSpec((tm, tk), lambda i, k: (i, k)),
                pl.BlockSpec((tk, h_pad), lambda i, k: (k, 0)),
                pl.BlockSpec((1, h_pad), lambda i, k: (0, 0),
                             pipeline_mode=pl.Buffered(1)),
                pl.BlockSpec((h_pad, c_pad), lambda i, k: (0, 0),
                             pipeline_mode=pl.Buffered(1)),
                pl.BlockSpec((1, c_pad), lambda i, k: (0, 0),
                             pipeline_mode=pl.Buffered(1)),
            ],
            out_specs=pl.BlockSpec((tm, c_pad), lambda i, k: (i, 0)),
            scratch_shapes=[pltpu.VMEM((tm, h_pad), jnp.float32)],
            compiler_params=pltpu.CompilerParams(
                dimension_semantics=("parallel", "arbitrary"),
                vmem_limit_bytes=_VMEM_LIMIT),
            cost_estimate=cost,
        )(xp, w1, b1, w2, b2)

    return out[:m, :meta.clas].reshape(b, s, meta.clas)


# ---------------------------------------------------------------------------
# Parameter init (matches nn.Linear default uniform init, PyTorch layouts)
# ---------------------------------------------------------------------------
def init_cls_params(key, dim1, dim2, clas):
    k1, k2, k3, k4 = jax.random.split(key, 4)
    bound1 = 1.0 / math.sqrt(dim1)
    bound2 = 1.0 / math.sqrt(dim2)
    return dict(
        fc_w=jax.random.uniform(k1, (dim2, dim1), jnp.float32, -bound1, bound1),
        fc_b=jax.random.uniform(k2, (dim2,), jnp.float32, -bound1, bound1),
        cls_w=jax.random.uniform(k3, (clas, dim2), jnp.float32, -bound2, bound2),
        cls_b=jax.random.uniform(k4, (clas,), jnp.float32, -bound2, bound2),
    )


def _ref_forward(x, params):
    b, s, d = x.shape
    xf = x.reshape(-1, d)
    h = jnp.maximum(xf @ params['fc_w'].T + params['fc_b'], 0.0)
    return (h @ params['cls_w'].T + params['cls_b']).reshape(b, s, -1)


if __name__ == "__main__":
    key = jax.random.PRNGKey(0)
    kp, kx, kp2, kx2 = jax.random.split(key, 4)

    # Small shapes consistent with CLS.forward: x is (batch, seq, dim1).
    b, s, dim1, dim2, clas = 2, 8, 32, 64, 6
    params = init_cls_params(kp, dim1, dim2, clas)
    x = jax.random.normal(kx, (b, s, dim1), jnp.float32)

    weights, meta = prepare_cls_params(params)          # one-time packing
    fwd = jax.jit(functools.partial(cls_forward, meta=meta))
    y = fwd(x, weights)
    jax.block_until_ready(y)

    ref = _ref_forward(x, params)
    assert y.shape == (b, s, clas)
    err = float(jnp.max(jnp.abs(y - ref)))
    # bf16 matmul inputs, fp32 accumulation -> ~1e-2-level agreement.
    assert err < 5e-2, err

    # Also exercise the K-tiled accumulator path (force tk < d_pad).
    dim1b = 256
    params_b = init_cls_params(kp2, dim1b, dim2, clas)
    x_b = jax.random.normal(kx2, (b, s, dim1b), jnp.float32)
    weights_b, meta_b = prepare_cls_params(params_b, force_tk=128)
    assert meta_b.nk > 1
    fwd_b = jax.jit(functools.partial(cls_forward, meta=meta_b))
    y_b = fwd_b(x_b, weights_b)
    jax.block_until_ready(y_b)
    err_b = float(jnp.max(jnp.abs(y_b - _ref_forward(x_b, params_b))))
    assert err_b < 1e-1, err_b

    print("KERNEL_OK")
</pallas_src>

<mosaic_0001>
module attributes {stable_mosaic.version = 11 : i64} {
  func.func @_cls_kernel(%arg0: i32, %arg1: memref<16x128xbf16, #tpu.memory_space<vmem>>, %arg2: memref<128x128xbf16, #tpu.memory_space<vmem>>, %arg3: memref<1x128xf32, #tpu.memory_space<vmem>>, %arg4: memref<128x128xbf16, #tpu.memory_space<vmem>>, %arg5: memref<1x128xf32, #tpu.memory_space<vmem>>, %arg6: memref<16x128xf32, #tpu.memory_space<vmem>>) attributes {dimension_semantics = [#tpu.dimension_semantics<parallel>], iteration_bounds = array<i64: 1>, scalar_prefetch = 0 : i64, scratch_operands = 0 : i64, tpu.core_type = #tpu.core_type<tc>, window_params = [{transform_indices = @transform_0, window_bounds = array<i64: 16, 128>}, {pipeline_mode = #tpu.pipeline_mode<synchronous>, transform_indices = @transform_1, window_bounds = array<i64: 128, 128>}, {pipeline_mode = #tpu.pipeline_mode<synchronous>, transform_indices = @transform_2, window_bounds = array<i64: 1, 128>}, {pipeline_mode = #tpu.pipeline_mode<synchronous>, transform_indices = @transform_3, window_bounds = array<i64: 128, 128>}, {pipeline_mode = #tpu.pipeline_mode<synchronous>, transform_indices = @transform_4, window_bounds = array<i64: 1, 128>}, {transform_indices = @transform_5, window_bounds = array<i64: 16, 128>}]} {
    %c0 = arith.constant 0 : index
    %c0_0 = arith.constant 0 : index
    %0 = vector.load %arg1[%c0, %c0_0] : memref<16x128xbf16, #tpu.memory_space<vmem>>, vector<16x128xbf16>
    %c0_1 = arith.constant 0 : index
    %c0_2 = arith.constant 0 : index
    %1 = vector.load %arg2[%c0_1, %c0_2] : memref<128x128xbf16, #tpu.memory_space<vmem>>, vector<128x128xbf16>
    %cst = arith.constant dense<0.000000e+00> : vector<16x128xf32>
    %2 = tpu.matmul %0, %1, %cst {dimension_numbers = #tpu.dot_dimension_numbers<[1], [0], [0], [1], [0, 0, 1, 1], [], []>} : vector<16x128xbf16>, vector<128x128xbf16>, vector<16x128xf32> -> vector<16x128xf32>
    %c0_3 = arith.constant 0 : index
    %c0_4 = arith.constant 0 : index
    %3 = vector.load %arg3[%c0_3, %c0_4] : memref<1x128xf32, #tpu.memory_space<vmem>>, vector<1x128xf32>
    %4 = vector.broadcast %3 : vector<1x128xf32> to vector<16x128xf32>
    %5 = arith.addf %2, %4 : vector<16x128xf32>
    %cst_5 = arith.constant 0.000000e+00 : f32
    %6 = vector.broadcast %cst_5 : f32 to vector<16x128xf32>
    %7 = arith.maximumf %5, %6 : vector<16x128xf32>
    %8 = arith.truncf %7 : vector<16x128xf32> to vector<16x128xbf16>
    %c0_6 = arith.constant 0 : index
    %c0_7 = arith.constant 0 : index
    %9 = vector.load %arg4[%c0_6, %c0_7] : memref<128x128xbf16, #tpu.memory_space<vmem>>, vector<128x128xbf16>
    %cst_8 = arith.constant dense<0.000000e+00> : vector<16x128xf32>
    %10 = tpu.matmul %8, %9, %cst_8 {dimension_numbers = #tpu.dot_dimension_numbers<[1], [0], [0], [1], [0, 0, 1, 1], [], []>} : vector<16x128xbf16>, vector<128x128xbf16>, vector<16x128xf32> -> vector<16x128xf32>
    %c0_9 = arith.constant 0 : index
    %c0_10 = arith.constant 0 : index
    %11 = vector.load %arg5[%c0_9, %c0_10] : memref<1x128xf32, #tpu.memory_space<vmem>>, vector<1x128xf32>
    %12 = vector.broadcast %11 : vector<1x128xf32> to vector<16x128xf32>
    %13 = arith.addf %10, %12 : vector<16x128xf32>
    %c0_11 = arith.constant 0 : index
    %c0_12 = arith.constant 0 : index
    %14 = vector.load %arg6[%c0_11, %c0_12] : memref<16x128xf32, #tpu.memory_space<vmem>>, vector<16x128xf32>
    tpu.vector_store %arg6[%c0_11, %c0_12], %13 {strides = array<i32>} : memref<16x128xf32, #tpu.memory_space<vmem>>, vector<16x128xf32>,
    return
  }
  func.func @transform_0(%arg0: i32) -> (i32, i32) {
    %c0_i32 = arith.constant 0 : i32
    %c0_i32_0 = arith.constant 0 : i32
    return %arg0, %c0_i32 : i32, i32
  }
  func.func @transform_1(%arg0: i32) -> (i32, i32) {
    %c0_i32 = arith.constant 0 : i32
    %c0_i32_0 = arith.constant 0 : i32
    %c0_i32_1 = arith.constant 0 : i32
    return %c0_i32, %c0_i32_0 : i32, i32
  }
  func.func @transform_2(%arg0: i32) -> (i32, i32) {
    %c0_i32 = arith.constant 0 : i32
    %c0_i32_0 = arith.constant 0 : i32
    %c0_i32_1 = arith.constant 0 : i32
    return %c0_i32, %c0_i32_0 : i32, i32
  }
  func.func @transform_3(%arg0: i32) -> (i32, i32) {
    %c0_i32 = arith.constant 0 : i32
    %c0_i32_0 = arith.constant 0 : i32
    %c0_i32_1 = arith.constant 0 : i32
    return %c0_i32, %c0_i32_0 : i32, i32
  }
  func.func @transform_4(%arg0: i32) -> (i32, i32) {
    %c0_i32 = arith.constant 0 : i32
    %c0_i32_0 = arith.constant 0 : i32
    %c0_i32_1 = arith.constant 0 : i32
    return %c0_i32, %c0_i32_0 : i32, i32
  }
  func.func @transform_5(%arg0: i32) -> (i32, i32) {
    %c0_i32 = arith.constant 0 : i32
    %c0_i32_0 = arith.constant 0 : i32
    return %arg0, %c0_i32 : i32, i32
  }
}

</mosaic_0001>

<bundles_post_ra>
// kernel: cls_forward.1
= control target key start
LH: loop header
LB: loop body
LE: loop exit
PB: predicated region body
PF: predicated region fallthrough
CT: control target
= control target key end

     0   :  { %10 = vsyncpa [#allocation3], 0  ;;  %s515_s0 = inlined_call_operand.vmem [shape: bf16[16,128], index: 0, kind: input, shape index: {}]   ;;  %s516_s1 = inlined_call_operand.hbm [shape: bf16[128,128], index: 1, kind: input, shape index: {}]   ;;  %s517_s2 = inlined_call_operand.vmem [shape: f32[1,128], index: 2, kind: input, shape index: {}]   ;;  %s518_s3 = inlined_call_operand.hbm [shape: bf16[128,128], index: 3, kind: input, shape index: {}]   ;;  %s519_s4 = inlined_call_operand.vmem [shape: f32[1,128], index: 4, kind: input, shape index: {}]   ;;  %s520_s5 = inlined_call_operand.vmem [shape: f32[16,128], index: 5, kind: output, shape index: {}]  }
   0x1   :  { %11 = vsyncpa [#allocation5], 0  ;;  %s440_s18 = smov [#allocation2]   ;;  %s392_s22 = scalar_lea.hbm %s516_s1, 1024 }
   0x2   :  { %s19_s19 = sshll.u32 %s440_s18, 4  ;;  %p393_p0 = scmp.ne.s32.totalorder %s516_s1, %s392_s22  ;;  %s20_s19 = int_to_ptr.vmem [resolvable:$true] %s19_s19 }
   0x3   :  { %p396_p1 = scmp.lt.u32.totalorder %s392_s22, %s516_s1 }
   0x5   :  { %p398_p2 = pnand %p396_p1, %p393_p0 }
   0x7   :  { %401 = shalt.err (!%p398_p2)
}
   0x8   :  { %s402_s27 = scalar_lea.vmem %s20_s19, 1024  ;;  %p407_p4 = scmp.lt.s32.totalorder %s20_s19, %s20_s19 }
   0x9   :  { %p403_p3 = scmp.ne.s32.totalorder %s20_s19, %s402_s27  ;;  %p408_p5 = scmp.lt.s32.totalorder %s402_s27, %s402_s27 }
   0xb   :  { %p409_p6 = por %p408_p5, %p407_p4 }
   0xd   :  { %p410_p7 = pnand %p409_p6, %p403_p3 }
   0xf   :  { %413 = shalt.err (!%p410_p7)
}
  0x10   :  { %s441_s28 = smov 64   ;;  %s442_s29 = smov 4  }
  0x11   :  { %25 = dma.hbm_to_vmem [thread:$0]  %s516_s1, 1024, %s20_s19, [#allocation3], %s441_s28, %s441_s28, %s442_s29  }
  0x12   :  { %s443_s7 = smov [#allocation4]   ;;  %s414_s11 = scalar_lea.hbm %s518_s3, 1024 }
  0x13   :  { %s33_s8 = sshll.u32 %s443_s7, 4  ;;  %p415_p8 = scmp.ne.s32.totalorder %s518_s3, %s414_s11  ;;  %s34_s8 = int_to_ptr.vmem [resolvable:$true] %s33_s8 }
  0x14   :  { %p418_p9 = scmp.lt.u32.totalorder %s414_s11, %s518_s3 }
  0x16   :  { %p420_p10 = pnand %p418_p9, %p415_p8 }
  0x18   :  { %423 = shalt.err (!%p420_p10)
}
  0x19   :  { %s424_s16 = scalar_lea.vmem %s34_s8, 1024  ;;  %p429_p12 = scmp.lt.s32.totalorder %s34_s8, %s34_s8 }
  0x1a   :  { %p425_p11 = scmp.ne.s32.totalorder %s34_s8, %s424_s16  ;;  %p430_p13 = scmp.lt.s32.totalorder %s424_s16, %s424_s16 }
  0x1c   :  { %p431_p0 = por %p430_p13, %p429_p12 }
  0x1e   :  { %p432_p1 = pnand %p431_p0, %p425_p11 }
  0x20   :  { %435 = shalt.err (!%p432_p1)
}
  0x21   :  { %39 = dma.hbm_to_vmem [thread:$0]  %s518_s3, 1024, %s34_s8, [#allocation5], %s441_s28, %s441_s28, %s442_s29  }
  0x22   :  { %436 = dma.done.wait [#allocation3], 1024  }
  0x23   :  { %437 = vsyncadd [#allocation3], 4294966272 }
  0x24   :  { %438 = dma.done.wait [#allocation5], 1024  }
  0x25   :  { %439 = vsyncadd [#allocation5], 4294966272  ;;  %v444_v0 = vmov 0.0   ;;  %vm445_vm0 = vmmov 0   ;;  %v375_v1 = vld [vmem:[#allocation2] sm:$0xff]   ;;  %v376_v2 = vld [vmem:[#allocation2 + $0x8] sm:$0xff]  }
  0x26   :  { %329 = vmatprep.subr.bf16.mxu0 %v444_v0  ;;  %345 = vmatprep.mubr.msk.bf16.mxu0 %vm445_vm0, %v444_v0  ;;  %v377_v3 = vld [vmem:[#allocation2 + $0x10] sm:$0xff]   ;;  %v384_v4 = vld [vmem:[#allocation4] sm:$0xff]   ;;  %v378_v5 = vld [vmem:[#allocation2 + $0x18] sm:$0xff]  }
  0x27   :  { %349 = vmatprep.subr.bf16.mxu1 %v444_v0  ;;  %365 = vmatprep.mubr.msk.bf16.mxu1 %vm445_vm0, %v444_v0  ;;  %v385_v6 = vld [vmem:[#allocation4 + $0x8] sm:$0xff]   ;;  %v379_v7 = vld [vmem:[#allocation2 + $0x20] sm:$0xff]   ;;  %v386_v8 = vld [vmem:[#allocation4 + $0x10] sm:$0xff]  }
  0x28   :  { %330 = vmatpush3.bf16.msra.mxu0 %v375_v1  ;;  %350 = vmatpush3.bf16.msra.mxu1 %v384_v4  ;;  %v380_v9 = vld [vmem:[#allocation2 + $0x28] sm:$0xff]   ;;  %v387_v10 = vld [vmem:[#allocation4 + $0x18] sm:$0xff]   ;;  %v381_v11 = vld [vmem:[#allocation2 + $0x30] sm:$0xff]  }
  0x29   :  { %331 = vmatprep.subr.bf16.mxu0 %v444_v0  ;;  %351 = vmatprep.subr.bf16.mxu1 %v444_v0  ;;  %v388_v12 = vld [vmem:[#allocation4 + $0x20] sm:$0xff]   ;;  %v382_v13 = vld [vmem:[#allocation2 + $0x38] sm:$0xff]   ;;  %v389_v14 = vld [vmem:[#allocation4 + $0x28] sm:$0xff]  }
  0x2a   :  { %v383_v15 = vld [vmem:[%s515_s0] sm:$0xff]   ;;  %v390_v16 = vld [vmem:[#allocation4 + $0x30] sm:$0xff]   ;;  %v391_v17 = vld [vmem:[#allocation4 + $0x38] sm:$0xff]  }
  0x2b   :  { %v292_v18 = vld [vmem:[%s517_s2] ss:$0 sm:$0xff] }
  0x2c   :  { %332 = vmatpush3.bf16.msra.mxu0 %v376_v2  ;;  %352 = vmatpush3.bf16.msra.mxu1 %v385_v6  ;;  %v302_v28 = vld [vmem:[%s519_s4] ss:$0 sm:$0xff] }
  0x2d   :  { %333 = vmatprep.subr.bf16.mxu0 %v444_v0  ;;  %353 = vmatprep.subr.bf16.mxu1 %v444_v0 }
  0x30   :  { %334 = vmatpush3.bf16.msra.mxu0 %v377_v3  ;;  %354 = vmatpush3.bf16.msra.mxu1 %v386_v8 }
  0x31   :  { %335 = vmatprep.subr.bf16.mxu0 %v444_v0  ;;  %355 = vmatprep.subr.bf16.mxu1 %v444_v0 }
  0x34   :  { %336 = vmatpush3.bf16.msra.mxu0 %v378_v5  ;;  %356 = vmatpush3.bf16.msra.mxu1 %v387_v10 }
  0x35   :  { %337 = vmatprep.subr.bf16.mxu0 %v444_v0  ;;  %357 = vmatprep.subr.bf16.mxu1 %v444_v0 }
  0x38   :  { %338 = vmatpush3.bf16.msra.mxu0 %v379_v7  ;;  %358 = vmatpush3.bf16.msra.mxu1 %v388_v12 }
  0x39   :  { %339 = vmatprep.subr.bf16.mxu0 %v444_v0  ;;  %359 = vmatprep.subr.bf16.mxu1 %v444_v0 }
  0x3c   :  { %340 = vmatpush3.bf16.msra.mxu0 %v380_v9  ;;  %360 = vmatpush3.bf16.msra.mxu1 %v389_v14 }
  0x3d   :  { %341 = vmatprep.subr.bf16.mxu0 %v444_v0  ;;  %361 = vmatprep.subr.bf16.mxu1 %v444_v0 }
  0x40   :  { %342 = vmatpush3.bf16.msra.mxu0 %v381_v11  ;;  %362 = vmatpush3.bf16.msra.mxu1 %v390_v16 }
  0x41   :  { %343 = vmatprep.subr.bf16.mxu0 %v444_v0  ;;  %363 = vmatprep.subr.bf16.mxu1 %v444_v0 }
  0x44   :  { %344 = vmatpush3.bf16.msra.mxu0 %v382_v13  ;;  %364 = vmatpush3.bf16.msra.mxu1 %v391_v17 }
  0x47   :  { %346 = vmatmul.mubr.bf16.vlgmr.msra.gmra.mrb[0].mxu0 %v383_v15 }
 0x11a   :  { %v162_v19 = vpop.f32.mrb[0].mxu0 }
 0x11b   :  { %v163_v20 = vadd.f32 %v292_v18, %v162_v19  ;;  %v347_v21 = vpop.f32.mrb[1].mxu0 }
 0x11c   :  { %v165_v22 = vpop.f32.mrb[2].mxu0 }
 0x11d   :  { %v166_v23 = vadd.f32 %v292_v18, %v165_v22  ;;  %v348_v24 = vpop.f32.mrb[3].mxu0  ;;  %v169_v25 = vmax.f32 %v163_v20, 0.0 }
 0x11f   :  { %v170_v26 = vmax.f32 %v166_v23, 0.0 }
 0x121   :  { %v171_v27 = vpack.c.bf16 %v170_v26, %v169_v25 }
 0x123   :  { %366 = vmatmul.mubr.bf16.vlgmr.msra.gmra.mrb[0].mxu1 %v171_v27 }
 0x1f6   :  { %v277_v29 = vpop.f32.mrb[0].mxu1 }
 0x1f7   :  { %v278_v30 = vadd.f32 %v302_v28, %v277_v29  ;;  %v367_v31 = vpop.f32.mrb[1].mxu1 }
 0x1f8   :  { %v280_v32 = vpop.f32.mrb[2].mxu1 }
 0x1f9   :  { %284 = vst [vmem:[%s520_s5] sm:$0xff] %v278_v30  ;;  %v281_v33 = vadd.f32 %v302_v28, %v280_v32  ;;  %v368_v34 = vpop.f32.mrb[3].mxu1 }
 0x1fb   :  { %285 = vst [vmem:[%s520_s5 + $0x8] sm:$0xff] %v281_v33 }
 0x1fc   :  { %290 = vsyncpa [#allocation3], 1 }
 0x1fd   :  { %291 = vsyncpa [#allocation5], 1 }

</bundles_post_ra>
